<compile_context>
chip_gen: v6e
topology: v6e:2x2x1
jax: 0.10.0
libtpu: 0.0.40
codegen_flags: <defaults>
</compile_context>

<pallas_src>
import functools

import jax
import jax.numpy as jnp
from jax import lax
from jax.experimental import pallas as pl
from jax.experimental.pallas import tpu as pltpu


# --------------------------------------------------------------------------
# Kernel 1: global average pool over the flattened spatial axis.
#   x_ref:    (1, TC, TS)  block of x reshaped to (N, Cin, S)
#   mean_ref: (1, TC, 1)   per-channel spatial mean (f32)
#   acc_ref:  (TC, 1)      f32 VMEM accumulator, persistent across the
#                          spatial-reduction grid axis
# --------------------------------------------------------------------------
def _gap_kernel(x_ref, mean_ref, acc_ref, *, S, TS, inv_S):
    s_idx = pl.program_id(2)

    @pl.when(s_idx == 0)
    def _init():
        acc_ref[...] = jnp.zeros_like(acc_ref)

    x = x_ref[0].astype(jnp.float32)                        # (TC, TS)
    if S % TS != 0:
        # Mask out-of-range columns of the ragged last spatial tile
        # (out-of-bounds input values are unspecified).
        col = lax.broadcasted_iota(jnp.int32, x.shape, 1) + s_idx * TS
        x = jnp.where(col < S, x, 0.0)
    acc_ref[...] += jnp.sum(x, axis=-1, keepdims=True)      # (TC, 1)

    @pl.when(s_idx == pl.num_programs(2) - 1)
    def _finalize():
        mean_ref[0] = (acc_ref[...] * inv_S).astype(mean_ref.dtype)


# --------------------------------------------------------------------------
# Kernel 2: 1x1 conv (no bias) + folded BatchNorm + ReLU, run ONCE per batch
# element (grid (N,)), producing the activated (N, Cout, 1) vector.
#   mean_ref:  (1, Cin, 1)   pooled means (f32)
#   w_ref:     (Cout, Cin)   1x1 conv weights (f32)
#   scale_ref: (Cout, 1)     folded BN scale
#   shift_ref: (Cout, 1)     folded BN shift
#   y_ref:     (1, Cout, 1)  activated vector (f32)
# --------------------------------------------------------------------------
def _proj_kernel(mean_ref, w_ref, scale_ref, shift_ref, y_ref):
    y = jnp.dot(w_ref[...], mean_ref[0],
                preferred_element_type=jnp.float32)          # (Cout, 1)
    y_ref[0] = jnp.maximum(y * scale_ref[...] + shift_ref[...], 0.0)


# --------------------------------------------------------------------------
# Kernel 3: "bilinear upsample from a 1x1 source" == pure broadcast store.
#   y_ref: (1, Cout, 1)   activated vector (f32)
#   o_ref: (1, Cout, TS)  output tile (flattened spatial last -> lane-dense)
# --------------------------------------------------------------------------
def _broadcast_kernel(y_ref, o_ref, *, Cout, TS):
    o_ref[0] = jnp.broadcast_to(y_ref[0], (Cout, TS)).astype(o_ref.dtype)


def _vmem_capacity_bytes():
    """Trace-time VMEM capacity query, with a conservative (v7x) fallback."""
    try:
        info = pltpu.get_tpu_info()
        cap = getattr(info, "vmem_capacity_bytes", None)
        if cap:
            return int(cap)
    except Exception:
        pass
    return 64 << 20


def aspp_pooling(x, weight, gamma, beta, running_mean, running_var, *,
                 eps=1e-5, channel_tile=None, spatial_tile=None,
                 bcast_spatial_tile=None):
    """Forward of _AsppPooling.

    x:       (N, Cin, H, W)    -- PyTorch NCHW layout
    weight:  (Cout, Cin, 1, 1) -- PyTorch Conv2d 1x1 layout
    returns: (N, Cout, H, W)
    """
    N, Cin, H, W = x.shape
    Cout = weight.shape[0]
    S = H * W
    itemsize = jnp.dtype(x.dtype).itemsize
    # Sublane packing: 8 rows for f32, 16 for bf16, 32 for int8/fp8.
    sub = max(8, 32 // itemsize)

    # Free reshape (spatial dims are contiguous in NCHW); no transpose, no pad.
    x_flat = x.reshape(N, Cin, S)

    # Fold BatchNorm (inference) into a per-channel affine after the 1x1 conv.
    scale = (gamma.astype(jnp.float32)
             / jnp.sqrt(running_var.astype(jnp.float32) + eps))
    shift = beta.astype(jnp.float32) - running_mean.astype(jnp.float32) * scale
    scale_col = scale.reshape(Cout, 1)
    shift_col = shift.reshape(Cout, 1)
    w2d = weight.reshape(Cout, Cin).astype(jnp.float32)      # 1x1 conv == matmul

    # ---- generation-aware VMEM budgets ----------------------------------
    vmem_cap = _vmem_capacity_bytes()
    # ~3/4 of physical VMEM (48 MiB on v7x's 64 MiB, 64 MiB on v5e/v6e's 128).
    vmem_limit = int(min(3 * vmem_cap // 4, 64 << 20))
    # Per single-buffer block budget; double-buffering keeps 2x of this plus
    # small side blocks inside vmem_limit.
    block_budget = int(min(vmem_limit // 4, 16 << 20))

    # ---- kernel-1 tile selection (dtype-aware) ---------------------------
    TS_CAP = 32768                                           # lanes per block
    if spatial_tile is None:
        spatial_tile = S if S <= TS_CAP else TS_CAP          # multiple of 128
    spatial_tile = min(spatial_tile, S)
    if channel_tile is None:
        if Cin * spatial_tile * itemsize <= block_budget or Cin <= sub:
            channel_tile = Cin
        else:
            channel_tile = max(
                sub, (block_budget // (spatial_tile * itemsize)) // sub * sub)
            channel_tile = min(channel_tile, Cin)
        # v7x has 2 TensorCores sharded over the "parallel" axes: at batch 1
        # make sure the channel axis provides at least 2 blocks of work.
        if N == 1 and channel_tile == Cin and Cin > sub:
            cand = ((Cin + 1) // 2 + sub - 1) // sub * sub
            if cand < Cin:
                channel_tile = cand
    assert spatial_tile == S or spatial_tile % 128 == 0
    assert channel_tile == Cin or channel_tile % sub == 0

    n_ctiles = pl.cdiv(Cin, channel_tile)
    n_stiles = pl.cdiv(S, spatial_tile)

    # ---- kernel 1: global average pool -> (N, Cin, 1) f32 ----------------
    gap = functools.partial(_gap_kernel, S=S, TS=spatial_tile, inv_S=1.0 / S)
    pooled = pl.pallas_call(
        gap,
        out_shape=jax.ShapeDtypeStruct((N, Cin, 1), jnp.float32),
        grid_spec=pltpu.PrefetchScalarGridSpec(
            num_scalar_prefetch=0,
            grid=(N, n_ctiles, n_stiles),
            in_specs=[pl.BlockSpec((1, channel_tile, spatial_tile),
                                   lambda n, c, s: (n, c, s))],
            out_specs=pl.BlockSpec((1, channel_tile, 1),
                                   lambda n, c, s: (n, c, 0)),
            scratch_shapes=[pltpu.VMEM((channel_tile, 1), jnp.float32)]),
        compiler_params=pltpu.CompilerParams(
            dimension_semantics=("parallel", "parallel", "arbitrary"),
            vmem_limit_bytes=vmem_limit),
    )(x_flat)

    # ---- kernel 2: hoisted 1x1 conv + BN + ReLU, once per batch ----------
    proj_out = pl.pallas_call(
        _proj_kernel,
        out_shape=jax.ShapeDtypeStruct((N, Cout, 1), jnp.float32),
        grid_spec=pltpu.PrefetchScalarGridSpec(
            num_scalar_prefetch=0,
            grid=(N,),
            in_specs=[
                pl.BlockSpec((1, Cin, 1), lambda n: (n, 0, 0)),
                pl.BlockSpec((Cout, Cin), lambda n: (0, 0)),
                pl.BlockSpec((Cout, 1), lambda n: (0, 0)),
                pl.BlockSpec((Cout, 1), lambda n: (0, 0)),
            ],
            out_specs=pl.BlockSpec((1, Cout, 1), lambda n: (n, 0, 0))),
        compiler_params=pltpu.CompilerParams(
            dimension_semantics=("parallel",),
            vmem_limit_bytes=vmem_limit),
    )(pooled, w2d, scale_col, shift_col)

    # ---- kernel 3: broadcast to (H, W); its own (Cout-scaled) tile -------
    if bcast_spatial_tile is None:
        if Cout * S * itemsize <= block_budget:
            bcast_spatial_tile = S
        else:
            bcast_spatial_tile = max(
                128, (block_budget // (Cout * itemsize)) // 128 * 128)
    bcast_spatial_tile = min(bcast_spatial_tile, S)
    assert bcast_spatial_tile == S or bcast_spatial_tile % 128 == 0
    n_stiles2 = pl.cdiv(S, bcast_spatial_tile)

    bcast = functools.partial(_broadcast_kernel,
                              Cout=Cout, TS=bcast_spatial_tile)
    out_flat = pl.pallas_call(
        bcast,
        out_shape=jax.ShapeDtypeStruct((N, Cout, S), x.dtype),
        grid_spec=pltpu.PrefetchScalarGridSpec(
            num_scalar_prefetch=0,
            grid=(N, n_stiles2),
            in_specs=[pl.BlockSpec((1, Cout, 1), lambda n, s: (n, 0, 0))],
            out_specs=pl.BlockSpec((1, Cout, bcast_spatial_tile),
                                   lambda n, s: (n, 0, s))),
        compiler_params=pltpu.CompilerParams(
            dimension_semantics=("parallel", "parallel"),
            vmem_limit_bytes=vmem_limit),
    )(proj_out)

    return out_flat.reshape(N, Cout, H, W)


def _reference(x, weight, gamma, beta, running_mean, running_var, *, eps=1e-5):
    N, Cin, H, W = x.shape
    Cout = weight.shape[0]
    pool = jnp.mean(x, axis=(2, 3))                         # (N, Cin)
    y = pool @ weight.reshape(Cout, Cin).T                  # (N, Cout)
    scale = gamma / jnp.sqrt(running_var + eps)
    shift = beta - running_mean * scale
    y = jnp.maximum(y * scale + shift, 0.0)
    # bilinear upsample from a 1x1 source (align_corners=True) == broadcast
    return jnp.broadcast_to(y[:, :, None, None], (N, Cout, H, W))


if __name__ == "__main__":
    def run_case(N, Cin, Cout, H, W, **kw):
        key = jax.random.PRNGKey(0)
        k_x, k_w, k_g, k_b, k_m, k_v = jax.random.split(key, 6)
        x = jax.random.normal(k_x, (N, Cin, H, W), dtype=jnp.float32)
        weight = jax.random.normal(k_w, (Cout, Cin, 1, 1),
                                   dtype=jnp.float32) * 0.1
        gamma = jax.random.normal(k_g, (Cout,), dtype=jnp.float32) * 0.1 + 1.0
        beta = jax.random.normal(k_b, (Cout,), dtype=jnp.float32) * 0.1
        running_mean = jax.random.normal(k_m, (Cout,), dtype=jnp.float32) * 0.1
        running_var = jax.random.uniform(k_v, (Cout,), dtype=jnp.float32,
                                         minval=0.5, maxval=1.5)

        out = aspp_pooling(x, weight, gamma, beta,
                           running_mean, running_var, **kw)
        out = jax.block_until_ready(out)

        ref = _reference(x, weight, gamma, beta, running_mean, running_var)
        assert out.shape == (N, Cout, H, W)
        err = float(jnp.max(jnp.abs(out - ref)))
        assert jnp.allclose(out, ref, atol=1e-5, rtol=1e-5), err

    # Primary small case; small tiles force the multi-tile reduction and
    # multi-tile broadcast paths (S = 256 -> 2 spatial tiles each).
    run_case(2, 4, 8, 16, 16, spatial_tile=128, bcast_spatial_tile=128)

    # Ragged channel tile (Cin % channel_tile != 0) and ragged spatial tail
    # (S = 225 not a multiple of 128) to exercise masking / discarded
    # overhang writeback.
    run_case(1, 12, 8, 15, 15, channel_tile=8, spatial_tile=128,
             bcast_spatial_tile=128)

    print("KERNEL_OK")
</pallas_src>

<mosaic_0001>
module attributes {stable_mosaic.version = 11 : i64} {
  func.func @_gap_kernel(%arg0: i32, %arg1: i32, %arg2: i32, %arg3: memref<1x4x128xf32, #tpu.memory_space<vmem>>, %arg4: memref<1x4x1xf32, #tpu.memory_space<vmem>>, %arg5: memref<4x1xf32, #tpu.memory_space<vmem>>) attributes {dimension_semantics = [#tpu.dimension_semantics<parallel>, #tpu.dimension_semantics<parallel>, #tpu.dimension_semantics<arbitrary>], iteration_bounds = array<i64: 2, 1, 2>, scalar_prefetch = 0 : i64, scratch_operands = 1 : i64, tpu.core_type = #tpu.core_type<tc>, window_params = [{transform_indices = @transform_0, window_bounds = array<i64: 1, 4, 128>}, {transform_indices = @transform_1, window_bounds = array<i64: 1, 4, 1>}]} {
    %c0_i32 = arith.constant 0 : i32
    %0 = arith.cmpi eq, %arg2, %c0_i32 : i32
    %1 = arith.extui %0 : i1 to i32
    %c0_i32_0 = arith.constant 0 : i32
    %2 = arith.cmpi ne, %1, %c0_i32_0 : i32
    scf.if %2 {
      %cst_8 = arith.constant 0.000000e+00 : f32
      %13 = vector.broadcast %cst_8 : f32 to vector<4x1xf32>
      %c0_9 = arith.constant 0 : index
      %c0_10 = arith.constant 0 : index
      %14 = vector.load %arg5[%c0_9, %c0_10] : memref<4x1xf32, #tpu.memory_space<vmem>>, vector<4x1xf32>
      tpu.vector_store %arg5[%c0_9, %c0_10], %13 {strides = array<i32>} : memref<4x1xf32, #tpu.memory_space<vmem>>, vector<4x1xf32>,
    } else {
    }
    %c0 = arith.constant 0 : index
    %c0_1 = arith.constant 0 : index
    %c0_2 = arith.constant 0 : index
    %3 = vector.load %arg3[%c0, %c0_1, %c0_2] : memref<1x4x128xf32, #tpu.memory_space<vmem>>, vector<1x4x128xf32>
    %4 = vector.shape_cast %3 : vector<1x4x128xf32> to vector<4x128xf32>
    %c0_3 = arith.constant 0 : index
    %c0_4 = arith.constant 0 : index
    %5 = vector.load %arg5[%c0_3, %c0_4] : memref<4x1xf32, #tpu.memory_space<vmem>>, vector<4x1xf32>
    %cst = arith.constant dense<0.000000e+00> : vector<4xf32>
    %6 = vector.multi_reduction <add>, %4, %cst [1] : vector<4x128xf32> to vector<4xf32>
    %7 = vector.shape_cast %6 : vector<4xf32> to vector<4x1xf32>
    %8 = arith.addf %5, %7 : vector<4x1xf32>
    %c0_5 = arith.constant 0 : index
    %c0_6 = arith.constant 0 : index
    %9 = vector.load %arg5[%c0_5, %c0_6] : memref<4x1xf32, #tpu.memory_space<vmem>>, vector<4x1xf32>
    tpu.vector_store %arg5[%c0_5, %c0_6], %8 {strides = array<i32>} : memref<4x1xf32, #tpu.memory_space<vmem>>, vector<4x1xf32>,
    %c1_i32 = arith.constant 1 : i32
    %10 = arith.cmpi eq, %arg2, %c1_i32 : i32
    %11 = arith.extui %10 : i1 to i32
    %c0_i32_7 = arith.constant 0 : i32
    %12 = arith.cmpi ne, %11, %c0_i32_7 : i32
    scf.if %12 {
      %c0_8 = arith.constant 0 : index
      %c0_9 = arith.constant 0 : index
      %13 = vector.load %arg5[%c0_8, %c0_9] : memref<4x1xf32, #tpu.memory_space<vmem>>, vector<4x1xf32>
      %cst_10 = arith.constant 3.906250e-03 : f32
      %14 = vector.broadcast %cst_10 : f32 to vector<4x1xf32>
      %15 = arith.mulf %13, %14 : vector<4x1xf32>
      %c0_11 = arith.constant 0 : index
      %c0_12 = arith.constant 0 : index
      %c0_13 = arith.constant 0 : index
      %16 = vector.load %arg4[%c0_11, %c0_12, %c0_13] : memref<1x4x1xf32, #tpu.memory_space<vmem>>, vector<1x4x1xf32>
      %17 = vector.shape_cast %16 : vector<1x4x1xf32> to vector<4x1xf32>
      %18 = vector.shape_cast %15 : vector<4x1xf32> to vector<1x4x1xf32>
      tpu.vector_store %arg4[%c0_11, %c0_12, %c0_13], %18 {strides = array<i32>} : memref<1x4x1xf32, #tpu.memory_space<vmem>>, vector<1x4x1xf32>,
    } else {
    }
    return
  }
  func.func @transform_0(%arg0: i32, %arg1: i32, %arg2: i32) -> (i32, i32, i32) {
    %c0_i32 = arith.constant 0 : i32
    return %arg0, %arg1, %arg2 : i32, i32, i32
  }
  func.func @transform_1(%arg0: i32, %arg1: i32, %arg2: i32) -> (i32, i32, i32) {
    %c0_i32 = arith.constant 0 : i32
    %c0_i32_0 = arith.constant 0 : i32
    return %arg0, %arg1, %c0_i32 : i32, i32, i32
  }
}

</mosaic_0001>

<bundles_post_ra>
// kernel: tpu_custom_call.1
= control target key start
LH: loop header
LB: loop body
LE: loop exit
PB: predicated region body
PF: predicated region fallthrough
CT: control target
= control target key end

     0   :  { %6 = vsyncpa [#allocation4], 0  ;;  %s603_s0 = inlined_call_operand.hbm [shape: f32[2,4,256], index: 0, kind: input, shape index: {}]   ;;  %s604_s1 = inlined_call_operand.vmem [shape: f32[2,4,1], index: 1, kind: output, shape index: {}]  }
   0x1   :  { %8 = vsyncpa [#allocation4 + $0x1], 0  ;;  %s476_s6 = smov 0   ;;  %s478_s7 = smov 0  }
   0x2   :  { %s480_s8 = smov 0   ;;  %s482_s9 = smov 0  }
   0x3   :  { %s484_s10 = smov 0   ;;  %s486_s11 = smov 0  }
   0x4   :  { %s488_s12 = smov 0   ;;  %s490_s13 = smov 0  }
   0x5 LB: > { %s282_s14 = sadd.s32 4294967295, %s462_s13   ;;  %s26_s15 = sadd.s32 1, %s454_s11  ;;  %s462_s13 = sphi %s490_s13, %s14_s13   ;;  %s458_s12 = sphi %s488_s12, %s614_s12   ;;  %s454_s11 = sphi %s486_s11, %s613_s11   ;;  %s450_s10 = sphi %s484_s10, %s612_s10   ;;  %s446_s9 = sphi %s482_s9, %s611_s9   ;;  %s442_s8 = sphi %s480_s8, %s610_s8   ;;  %s438_s7 = sphi %s478_s7, %s609_s7   ;;  %s434_s6 = sphi %s476_s6, %s608_s6  }
   0x6   : > { %p27_p0 = scmp.ge.s32.totalorder %s26_s15, 2  ;;  %s33_s16 = sadd.s32 1, %s458_s12 }
   0x7   : > { %s44_s17 = sadd.s32 1, %s442_s8  ;;  %p51_p1 = scmp.ne.s32.totalorder %s442_s8, %s438_s7 }
   0x8   : > { %s616_s15 = smov (%p27_p0, %s26_s15), 0  ;;  %s618_s16 = smov (!%p27_p0, %s33_s16), %s458_s12 }
   0x9   : > { %s40_s18 = ssub.s32 %s454_s11, %s616_s15  ;;  %p52_p2 = scmp.eq.s32.totalorder %s462_s13, 0 }
   0xa   : > { %p35_p3 = scmp.ge.s32.totalorder %s618_s16, 2  ;;  %p57_p4 = scmp.ne.s32.totalorder %s438_s7, %s434_s6 }
   0xb   : > { %p527_p5 = por %p52_p2, %p51_p1  ;;  %p58_p6 = scmp.eq.s32.totalorder %s282_s14, 0 }
   0xc   : > { %s620_s16 = smov (%p35_p3, %s618_s16), 0  ;;  %p302_p8 = scmp.lt.s32.totalorder %s462_s13, 4 }
   0xd   : > { %p533_p7 = por %p58_p6, %p57_p4  ;;  %s37_s21 = ssub.s32 %s458_s12, %s620_s16 }
   0xe   : > { %s41_s22 = sor.u32 %s40_s18, %s37_s21  ;;  %s109_s23 = sand.u32 1, %s442_s8  }
   0xf   : > { %p42_p9 = scmp.eq.s32.totalorder %s41_s22, 0  ;;  %s286_s24 = sshll.u32 %s109_s23, 2 }
  0x10   : > { %s287_s25 = sshll.u32 %s458_s12, 1  ;;  %s113_s29 = scalar_lea.vmem [#allocation3], %s286_s24 }
  0x11   : > { %s543_s26 = scalar_select %p42_p9, %s442_s8, %s44_s17  }
  0x12   : > { %s120_s27 = sadd.s32 %s454_s11, %s287_s25  ;;  %s124_s30 = sshll.u32 %s113_s29, 4  ;;  %s125_s30 = int_to_ptr.vmem [resolvable:$true] %s124_s30 }
  0x13   : > { %s288_s28 = sshll.u32 %s120_s27, 6  ;;  %p553_p10 = pnand %p302_p8, %p527_p5 }
  0x14   : > { %s122_s4 = scalar_lea.hbm %s603_s0, %s288_s28  ;;  %p289_p11 = scmp.ge.s32.totalorder %s462_s13, 1 }
  0x15   : > { %p129_p12 = scmp.lt.s32.totalorder %s462_s13, 5  ;;  %s110_s6 = scalar_lea.sflag [#allocation4], %s109_s23 }
  0x16   : > { %p370_p13 = pneg %p553_p10  ;;  %s381_s14 = scalar_lea.vmem %s125_s30, 64 }
  0x17   : > { %p382_p0 = scmp.ne.s32.totalorder %s125_s30, %s381_s14  ;;  %s464_s17 = smov [#allocation3]  }
  0x18   : > { %s386_s18 = sshll.u32 %s464_s17, 4  ;;  %s387_s18 = int_to_ptr.vmem [resolvable:$false] %s386_s18 }
  0x19   : > { %p384_p1 = pnand %p382_p0, %p370_p13  ;;  %s388_s21 = scalar_lea.vmem %s387_s18, 128 }
  0x1a   : > { %p389_p3 = scmp.lt.s32.totalorder %s125_s30, %s387_s18  ;;  %p390_p4 = scmp.lt.s32.totalorder %s388_s21, %s381_s14 }
  0x1b   : > { %p385_p2 = pneg %p384_p1 }
  0x1c   : > { %p391_p5 = por %p390_p4, %p389_p3 }
  0x1e   : > { %p392_p6 = pnand %p391_p5, %p385_p2 }
  0x20   : > { %395 = shalt.err (!%p392_p6)
}
  0x21   : > { %301 = dma.hbm_to_vmem [thread:$0]  (!%p553_p10), %s122_s4, 64, %s125_s30, %s110_s6  }
  0x22   : > { %p130_p8 = pnand %p289_p11, %p129_p12 }
  0x23   : > { %s135_s19 = sand.u32 (!%p130_p8), 1, %s438_s7  }
  0x24   : > { %133 = sbr.rel (%p130_p8) target bundleno = 204 (0xcc), region = 24  ;;  %s290_s22 = sshll.u32 (!%p130_p8), %s135_s19, 2 }
  0x25   : > { %s136_s23 = scalar_lea.sflag (!%p130_p8), [#allocation4], %s135_s19  ;;  %s139_s24 = scalar_lea.vmem (!%p130_p8), [#allocation3], %s290_s22 }
  0x29   : > { %429 = dma.done.wait (%p533_p7), %s136_s23, 64  }
  0x2a   : > { %431 = vsyncadd (%p533_p7), %s136_s23, 4294967232  ;;  %p160_p9 = scmp.lt.s32.totalorder %s450_s10, 1  ;;  %p292_p10 = scmp.ne.s32.totalorder %s446_s9, 0 }
  0x2c   : > { %s622_s10 = smov (!%p160_p9, %s450_s10), 1  ;;  %170 = sbr.rel (%p292_p10) target bundleno = 51 (0x33), region = 32 }
  0x2d   : > { %s291_s25 = sshll.u32 %s622_s10, 2 }
  0x2e   : > { %s166_s29 = scalar_lea.vmem %s604_s1, %s291_s25 }
  0x31   : > { %vm171_vm0 = vcmask 3072   ;;  %v465_v0 = vmov 0.0  }
  0x32   : > { %172 = vst.msk [vmem:[#allocation2] sm:$0xf] %vm171_vm0, %v465_v0 }
  0x33 PF: > { %v173_v1 = vld [vmem:[%s139_s24] sm:$0xf]  ;;  %vm175_vm1 = vcmask 1043456   ;;  %vm180_vm2 = vcmask 3072   ;;  %p293_p7 = scmp.ne.s32.totalorder %s446_s9, 1 }
  0x34   : > { %v176_v2 = vsel %vm175_vm1, %v173_v1, 0.0 }
  0x35   : > { %177 = vadd.xlane.f32.xlu0 %v176_v2 }
  0x39   : > { %v174_v3 = vld [vmem:[#allocation2] sm:$0xf] }
  0xbd   : > { %185 = sbr.rel (%p293_p7) target bundleno = 204 (0xcc), region = 36 }
  0xbe   : > { %v178_v4 = vpop.xlane.xlu0 %177 }
  0xbf   : > { %v179_v5 = vadd.f32 %v178_v4, %v174_v3 }
  0xc1   : > { %181 = vst.msk [vmem:[#allocation2] sm:$0xf] %vm180_vm2, %v179_v5 }
  0xc8   : > { %v186_v6 = vld [vmem:[#allocation2] sm:$0xf] }
  0xc9   : > { %v187_v7 = vmul.f32 0.00390625, %v186_v6 }
  0xcb   : > { %188 = vst.msk [vmem:[%s166_s29] sm:$0xf] %vm180_vm2, %v187_v7 }
  0xcc PF: > { %s14_s13 = sadd.s32 1, %s462_s13   ;;  %s608_s6 = smov %s438_s7 }
  0xcd   : > { %p11_p11 = scmp.ge.s32.totalorder %s14_s13, 6   ;;  %s609_s7 = smov %s442_s8 }
  0xce   : > { %s610_s8 = smov %s543_s26  ;;  %s611_s9 = smov %s454_s11 }
  0xcf   : > { %s612_s10 = smov %s458_s12  ;;  %s613_s11 = smov %s616_s15 }
  0xd0   : > { %s614_s12 = smov %s620_s16  ;;  %13 = sbr.rel (!%p11_p11) target bundleno = 5 (0x5), region = 72 }
  0xd5   :  { %214 = vsyncpa [#allocation4], 1 }
  0xd6   :  { %216 = vsyncpa [#allocation4 + $0x1], 1 }

</bundles_post_ra>
